<compile_context>
chip_gen: v7x
topology: tpu7x:2x2x1
jax: 0.10.0
libtpu: 0.0.40
codegen_flags: <defaults>
</compile_context>

<pallas_src>
import functools

import jax
import jax.numpy as jnp
from jax.experimental import pallas as pl
from jax.experimental.pallas import tpu as pltpu  # noqa: F401  (single-block kernel; no TPU-specific API needed)

Z_RATIO = 0.8
GN_EPS = 1e-5
LEAKY_SLOPE = 0.2
DP = 128                      # lane-padded feature width (in_channels, out_channels <= 128)


# ----------------------------- fused GLASSConv kernel -----------------------------------

def _glass_conv_kernel(x_ref, m_ref, adj_ref,
                       wt_ref, bt_ref,
                       wg_ref, asrc_ref, adst_ref, bg_ref,
                       gnw_ref, gnb_ref, gnms_ref,
                       wca_ref, wcb_ref, bc_ref,
                       o_ref, *, n_valid, hp, z, eps, slope):
    f32 = jnp.float32
    bf16 = jnp.bfloat16

    x = x_ref[...]                                   # [Np, Dp] f32 (zero-padded)
    x_b = x.astype(bf16)
    m = m_ref[...] > 0.5                             # [Np, 1] subgraph label

    # ---- trans pair (merged): [x@Wt0 | x@Wt1] in one wide MXU dot, ReLU, z-ratio mix.
    t = jnp.dot(x_b, wt_ref[...], preferred_element_type=f32) + bt_ref[...]   # [Np, 2*Hp]
    t = jnp.maximum(t, 0.0)
    x0, x1 = t[:, :hp], t[:, hp:]
    xm = jnp.where(m, z * x1 + (1.0 - z) * x0, z * x0 + (1.0 - z) * x1)

    # ---- GATConv (heads=1, add_self_loops=True); edge_attr ignored (edge_dim=None).
    h = jnp.dot(xm.astype(bf16), wg_ref[...], preferred_element_type=f32)     # [Np, Hp]
    h_b = h.astype(bf16)
    # a_dst[i] = <h_i, att_dst>  : broadcast-mul + lane reduce (VPU/XLU, rides under the dots)
    a_dst = jnp.sum(h * adst_ref[...], axis=-1, keepdims=True)                # [Np, 1]
    # a_src[j] as a ROW: (att_src padded to 8 sublanes) @ h^T  — "nt" MXU dot, no transpose.
    a_src8 = jax.lax.dot_general(asrc_ref[...], h_b, (((1,), (1,)), ((), ())),
                                 preferred_element_type=f32)                  # [8, Np]
    a_src = a_src8[0:1, :]                                                    # [1, Np]

    scores = a_dst + a_src                                                    # [Np, Np]
    scores = jnp.where(scores >= 0.0, scores, slope * scores)                 # LeakyReLU(0.2)
    scores = jnp.where(adj_ref[...] > 0.5, scores, -1e30)                     # mask non-edges
    mx = jnp.max(scores, axis=-1, keepdims=True)
    ex = jnp.exp(scores - mx)
    alpha = ex * pl.reciprocal(jnp.sum(ex, axis=-1, keepdims=True), approx=True)
    agg = jnp.dot(alpha.astype(bf16), h_b, preferred_element_type=f32) + bg_ref[...]

    # ---- GraphNorm over the n_valid real nodes (padded rows excluded from the stats).
    row_id = jax.lax.broadcasted_iota(jnp.int32, (agg.shape[0], 1), 0)
    valid = (row_id < n_valid).astype(f32)
    inv_n = 1.0 / float(n_valid)
    mean = jnp.sum(agg * valid, axis=0, keepdims=True) * inv_n
    centered = agg - gnms_ref[...] * mean
    var = jnp.sum(centered * centered * valid, axis=0, keepdims=True) * inv_n
    gn = centered * jax.lax.rsqrt(var + eps) * gnw_ref[...] + gnb_ref[...]
    # F.dropout(p=0.2): identity at inference.

    # ---- comb pair (merged); cat([gn, x_]) folded into two dots: gn @ Wc_top + x_ @ Wc_bot.
    c = (jnp.dot(gn.astype(bf16), wca_ref[...], preferred_element_type=f32)
         + jnp.dot(x_b, wcb_ref[...], preferred_element_type=f32) + bc_ref[...])  # [Np, 2*Hp]
    y0, y1 = c[:, :hp], c[:, hp:]
    o_ref[...] = jnp.where(m, z * y1 + (1.0 - z) * y0, z * y0 + (1.0 - z) * y1)


# ----------------------------- wrapper -----------------------------------------------------

def build_adjacency(edge_index, num_nodes):
    # adj[dst, src] = 1 for every edge, plus self-loops (GATConv add_self_loops=True).
    # TODO(synk): parallel (duplicate) edges collapse to one entry in the dense adjacency;
    #             PyG GATConv would softmax each duplicate edge separately.
    src, dst = edge_index[0], edge_index[1]
    adj = jnp.zeros((num_nodes, num_nodes), jnp.float32)
    adj = adj.at[dst, src].set(1.0)
    idx = jnp.arange(num_nodes)
    adj = adj.at[idx, idx].set(1.0)
    return adj


def glass_conv_forward(prep, x_, edge_index, edge_attr, mask, *, d_out, z_ratio=Z_RATIO):
    """GLASSConv.forward(x_, edge_index, edge_attr, mask).  edge_attr is ignored by the
    GATConv (edge_dim=None), matching the PyTorch module."""
    del edge_attr
    n, d_in = x_.shape
    np_ = ((n + 7) // 8) * 8                              # sublane-align the node axis
    # Lane-pad activations to DP=128 (weights were padded once at prep time).
    x_pad = jnp.zeros((np_, DP), jnp.float32).at[:n, :d_in].set(x_)
    m_col = jnp.zeros((np_, 1), jnp.float32).at[:n, 0].set(mask.astype(jnp.float32))
    adj = build_adjacency(edge_index, n)
    adj_pad = jnp.zeros((np_, np_), jnp.float32).at[:n, :n].set(adj)
    # TODO(synk): for large graphs, tile the dst-row axis with a grid (online softmax over
    #             src tiles) so the dense [N, N] scores never have to fit VMEM at once
    #             (v7x: 64 MiB) and the row axis can be marked "parallel" for 2 TensorCores.
    out_pad = pl.pallas_call(
        functools.partial(_glass_conv_kernel, n_valid=n, hp=DP, z=z_ratio,
                          eps=GN_EPS, slope=LEAKY_SLOPE),
        out_shape=jax.ShapeDtypeStruct((np_, DP), jnp.float32),
    )(x_pad, m_col, adj_pad,
      prep["wt"], prep["bt"], prep["wg"], prep["asrc"], prep["adst"], prep["bg"],
      prep["gnw"], prep["gnb"], prep["gnms"], prep["wca"], prep["wcb"], prep["bc"])
    return out_pad[:n, :d_out]


# ----------------------------- parameters (deterministic init + one-time prep) -------------

def _linear_params(key, in_dim, out_dim):
    kw, kb = jax.random.split(key)
    bound = 1.0 / (in_dim ** 0.5)
    return {"w": jax.random.uniform(kw, (in_dim, out_dim), jnp.float32, -bound, bound),
            "b": jax.random.uniform(kb, (1, out_dim), jnp.float32, -bound, bound)}


def init_glass_params(key, in_channels, out_channels):
    # GATConv(in, out) receives the trans-mixed features (dim=out); the PyTorch module is
    # only well-formed when in_channels == out_channels.
    assert in_channels == out_channels
    k = jax.random.split(key, 7)
    bound = 1.0 / (out_channels ** 0.5)
    return {
        "trans0": _linear_params(k[0], in_channels, out_channels),
        "trans1": _linear_params(k[1], in_channels, out_channels),
        # comb weight rows: [0:out] act on the GAT/GraphNorm output, [out:out+in] act on x_
        "comb0": _linear_params(k[2], out_channels + in_channels, out_channels),
        "comb1": _linear_params(k[3], out_channels + in_channels, out_channels),
        "gat": {
            "w": jax.random.uniform(k[4], (out_channels, out_channels), jnp.float32, -bound, bound),
            "att_src": jax.random.uniform(k[5], (out_channels,), jnp.float32, -bound, bound),
            "att_dst": jax.random.uniform(k[6], (out_channels,), jnp.float32, -bound, bound),
            "bias": jnp.zeros((1, out_channels), jnp.float32),
        },
        "gn": {"weight": jnp.ones((1, out_channels), jnp.float32),
               "bias": jnp.zeros((1, out_channels), jnp.float32),
               "mean_scale": jnp.ones((1, out_channels), jnp.float32)},
    }


def _pad2(a, rows, cols):
    return jnp.zeros((rows, cols), a.dtype).at[:a.shape[0], :a.shape[1]].set(a)


def prepare_glass_params(p, in_channels, out_channels, dp=DP):
    """One-time weight prep: merge (trans0|trans1) and (comb0|comb1) into single wide matmuls,
    split the comb weights so cat([gat_out, x_]) never materializes, zero-pad everything to
    128 lanes, and pre-cast the matmul weights to bf16 for the MXU."""
    assert in_channels <= dp and out_channels <= dp
    bf16 = jnp.bfloat16
    h = out_channels
    wt = jnp.concatenate([_pad2(p["trans0"]["w"], dp, dp),
                          _pad2(p["trans1"]["w"], dp, dp)], axis=1).astype(bf16)
    bt = jnp.concatenate([_pad2(p["trans0"]["b"], 1, dp),
                          _pad2(p["trans1"]["b"], 1, dp)], axis=1)
    wg = _pad2(p["gat"]["w"], dp, dp).astype(bf16)
    asrc = jnp.zeros((8, dp), bf16).at[0, :h].set(p["gat"]["att_src"].astype(bf16))
    adst = _pad2(p["gat"]["att_dst"].reshape(1, -1), 1, dp)
    bg = _pad2(p["gat"]["bias"], 1, dp)
    gnw = _pad2(p["gn"]["weight"], 1, dp)
    gnb = _pad2(p["gn"]["bias"], 1, dp)
    gnms = _pad2(p["gn"]["mean_scale"], 1, dp)
    wc0, wc1 = p["comb0"]["w"], p["comb1"]["w"]
    wca = jnp.concatenate([_pad2(wc0[:h], dp, dp), _pad2(wc1[:h], dp, dp)], axis=1).astype(bf16)
    wcb = jnp.concatenate([_pad2(wc0[h:], dp, dp), _pad2(wc1[h:], dp, dp)], axis=1).astype(bf16)
    bc = jnp.concatenate([_pad2(p["comb0"]["b"], 1, dp),
                          _pad2(p["comb1"]["b"], 1, dp)], axis=1)
    return {"wt": wt, "bt": bt, "wg": wg, "asrc": asrc, "adst": adst, "bg": bg,
            "gnw": gnw, "gnb": gnb, "gnms": gnms, "wca": wca, "wcb": wcb, "bc": bc}


# ----------------------------- demo --------------------------------------------------------

if __name__ == "__main__":
    in_channels = out_channels = 32          # hidden width used by the GLASS policy network
    num_nodes, num_edges = 16, 48

    root = jax.random.PRNGKey(0)
    kp, kx, ke, ks, kd, km = jax.random.split(root, 6)

    raw = init_glass_params(kp, in_channels, out_channels)
    prep = prepare_glass_params(raw, in_channels, out_channels)     # one-time weight prep

    x_ = jax.random.normal(kx, (num_nodes, in_channels), jnp.float32)
    edge_attr = jax.random.normal(ke, (num_edges, in_channels), jnp.float32)  # ignored (edge_dim=None)
    src = jax.random.randint(ks, (num_edges,), 0, num_nodes)
    dst = jax.random.randint(kd, (num_edges,), 0, num_nodes)
    edge_index = jnp.stack([src, dst], axis=0)
    mask = jax.random.bernoulli(km, 0.5, (num_nodes,))

    fwd = jax.jit(functools.partial(glass_conv_forward, d_out=out_channels, z_ratio=Z_RATIO))
    out = fwd(prep, x_, edge_index, edge_attr, mask)
    jax.block_until_ready(out)

    assert out.shape == (num_nodes, out_channels)
    assert bool(jnp.all(jnp.isfinite(out)))
    print("KERNEL_OK")
</pallas_src>

<mosaic_0001>
module attributes {stable_mosaic.version = 11 : i64} {
  func.func @_glass_conv_kernel(%arg0: memref<16x128xf32, #tpu.memory_space<vmem>>, %arg1: memref<16x1xf32, #tpu.memory_space<vmem>>, %arg2: memref<16x16xf32, #tpu.memory_space<vmem>>, %arg3: memref<128x256xbf16, #tpu.memory_space<vmem>>, %arg4: memref<1x256xf32, #tpu.memory_space<vmem>>, %arg5: memref<128x128xbf16, #tpu.memory_space<vmem>>, %arg6: memref<8x128xbf16, #tpu.memory_space<vmem>>, %arg7: memref<1x128xf32, #tpu.memory_space<vmem>>, %arg8: memref<1x128xf32, #tpu.memory_space<vmem>>, %arg9: memref<1x128xf32, #tpu.memory_space<vmem>>, %arg10: memref<1x128xf32, #tpu.memory_space<vmem>>, %arg11: memref<1x128xf32, #tpu.memory_space<vmem>>, %arg12: memref<128x256xbf16, #tpu.memory_space<vmem>>, %arg13: memref<128x256xbf16, #tpu.memory_space<vmem>>, %arg14: memref<1x256xf32, #tpu.memory_space<vmem>>, %arg15: memref<16x128xf32, #tpu.memory_space<vmem>>) attributes {dimension_semantics = [], scalar_prefetch = 0 : i64, scratch_operands = 0 : i64, tpu.core_type = #tpu.core_type<tc>} {
    %c0 = arith.constant 0 : index
    %c0_0 = arith.constant 0 : index
    %0 = vector.load %arg0[%c0, %c0_0] : memref<16x128xf32, #tpu.memory_space<vmem>>, vector<16x128xf32>
    %1 = arith.truncf %0 : vector<16x128xf32> to vector<16x128xbf16>
    %c0_1 = arith.constant 0 : index
    %c0_2 = arith.constant 0 : index
    %2 = vector.load %arg1[%c0_1, %c0_2] : memref<16x1xf32, #tpu.memory_space<vmem>>, vector<16x1xf32>
    %cst = arith.constant 5.000000e-01 : f32
    %3 = vector.broadcast %cst : f32 to vector<16x1xf32>
    %4 = arith.cmpf ogt, %2, %3 : vector<16x1xf32>
    %c0_3 = arith.constant 0 : index
    %c0_4 = arith.constant 0 : index
    %5 = vector.load %arg3[%c0_3, %c0_4] : memref<128x256xbf16, #tpu.memory_space<vmem>>, vector<128x256xbf16>
    %cst_5 = arith.constant dense<0.000000e+00> : vector<16x256xf32>
    %6 = tpu.matmul %1, %5, %cst_5 {dimension_numbers = #tpu.dot_dimension_numbers<[1], [0], [0], [1], [0, 0, 1, 1], [], []>} : vector<16x128xbf16>, vector<128x256xbf16>, vector<16x256xf32> -> vector<16x256xf32>
    %c0_6 = arith.constant 0 : index
    %c0_7 = arith.constant 0 : index
    %7 = vector.load %arg4[%c0_6, %c0_7] : memref<1x256xf32, #tpu.memory_space<vmem>>, vector<1x256xf32>
    %8 = vector.broadcast %7 : vector<1x256xf32> to vector<16x256xf32>
    %9 = arith.addf %6, %8 : vector<16x256xf32>
    %cst_8 = arith.constant 0.000000e+00 : f32
    %10 = vector.broadcast %cst_8 : f32 to vector<16x256xf32>
    %11 = arith.maximumf %9, %10 : vector<16x256xf32>
    %12 = vector.extract_strided_slice %11 {offsets = [0, 0], sizes = [16, 128], strides = [1, 1]} : vector<16x256xf32> to vector<16x128xf32>
    %13 = vector.extract_strided_slice %11 {offsets = [0, 128], sizes = [16, 128], strides = [1, 1]} : vector<16x256xf32> to vector<16x128xf32>
    %cst_9 = arith.constant 8.000000e-01 : f32
    %14 = vector.broadcast %cst_9 : f32 to vector<16x128xf32>
    %15 = arith.mulf %14, %13 : vector<16x128xf32>
    %cst_10 = arith.constant 2.000000e-01 : f32
    %16 = vector.broadcast %cst_10 : f32 to vector<16x128xf32>
    %17 = arith.mulf %16, %12 : vector<16x128xf32>
    %18 = arith.addf %15, %17 : vector<16x128xf32>
    %cst_11 = arith.constant 8.000000e-01 : f32
    %19 = vector.broadcast %cst_11 : f32 to vector<16x128xf32>
    %20 = arith.mulf %19, %12 : vector<16x128xf32>
    %cst_12 = arith.constant 2.000000e-01 : f32
    %21 = vector.broadcast %cst_12 : f32 to vector<16x128xf32>
    %22 = arith.mulf %21, %13 : vector<16x128xf32>
    %23 = arith.addf %20, %22 : vector<16x128xf32>
    %24 = vector.shape_cast %4 : vector<16x1xi1> to vector<16x1xi1>
    %25 = vector.broadcast %24 : vector<16x1xi1> to vector<16x128xi1>
    %26 = arith.select %25, %18, %23 : vector<16x128xi1>, vector<16x128xf32>
    %27 = arith.truncf %26 : vector<16x128xf32> to vector<16x128xbf16>
    %c0_13 = arith.constant 0 : index
    %c0_14 = arith.constant 0 : index
    %28 = vector.load %arg5[%c0_13, %c0_14] : memref<128x128xbf16, #tpu.memory_space<vmem>>, vector<128x128xbf16>
    %cst_15 = arith.constant dense<0.000000e+00> : vector<16x128xf32>
    %29 = tpu.matmul %27, %28, %cst_15 {dimension_numbers = #tpu.dot_dimension_numbers<[1], [0], [0], [1], [0, 0, 1, 1], [], []>} : vector<16x128xbf16>, vector<128x128xbf16>, vector<16x128xf32> -> vector<16x128xf32>
    %30 = arith.truncf %29 : vector<16x128xf32> to vector<16x128xbf16>
    %c0_16 = arith.constant 0 : index
    %c0_17 = arith.constant 0 : index
    %31 = vector.load %arg7[%c0_16, %c0_17] : memref<1x128xf32, #tpu.memory_space<vmem>>, vector<1x128xf32>
    %32 = vector.broadcast %31 : vector<1x128xf32> to vector<16x128xf32>
    %33 = arith.mulf %29, %32 : vector<16x128xf32>
    %cst_18 = arith.constant dense<0.000000e+00> : vector<16xf32>
    %34 = vector.multi_reduction <add>, %33, %cst_18 [1] : vector<16x128xf32> to vector<16xf32>
    %35 = vector.shape_cast %34 : vector<16xf32> to vector<16x1xf32>
    %c0_19 = arith.constant 0 : index
    %c0_20 = arith.constant 0 : index
    %36 = vector.load %arg6[%c0_19, %c0_20] : memref<8x128xbf16, #tpu.memory_space<vmem>>, vector<8x128xbf16>
    %cst_21 = arith.constant dense<0.000000e+00> : vector<8x16xf32>
    %37 = tpu.matmul %36, %30, %cst_21 {dimension_numbers = #tpu.dot_dimension_numbers<[1], [1], [0], [0], [0, 0, 1, 0], [], []>} : vector<8x128xbf16>, vector<16x128xbf16>, vector<8x16xf32> -> vector<8x16xf32>
    %38 = vector.extract_strided_slice %37 {offsets = [0, 0], sizes = [1, 16], strides = [1, 1]} : vector<8x16xf32> to vector<1x16xf32>
    %39 = vector.broadcast %35 : vector<16x1xf32> to vector<16x16xf32>
    %40 = vector.broadcast %38 : vector<1x16xf32> to vector<16x16xf32>
    %41 = arith.addf %39, %40 : vector<16x16xf32>
    %cst_22 = arith.constant 0.000000e+00 : f32
    %42 = vector.broadcast %cst_22 : f32 to vector<16x16xf32>
    %43 = arith.cmpf oge, %41, %42 : vector<16x16xf32>
    %cst_23 = arith.constant 2.000000e-01 : f32
    %44 = vector.broadcast %cst_23 : f32 to vector<16x16xf32>
    %45 = arith.mulf %44, %41 : vector<16x16xf32>
    %46 = arith.select %43, %41, %45 : vector<16x16xi1>, vector<16x16xf32>
    %c0_24 = arith.constant 0 : index
    %c0_25 = arith.constant 0 : index
    %47 = vector.load %arg2[%c0_24, %c0_25] : memref<16x16xf32, #tpu.memory_space<vmem>>, vector<16x16xf32>
    %cst_26 = arith.constant 5.000000e-01 : f32
    %48 = vector.broadcast %cst_26 : f32 to vector<16x16xf32>
    %49 = arith.cmpf ogt, %47, %48 : vector<16x16xf32>
    %cst_27 = arith.constant -1.000000e+30 : f32
    %50 = vector.broadcast %cst_27 : f32 to vector<16x16xf32>
    %51 = arith.select %49, %46, %50 : vector<16x16xi1>, vector<16x16xf32>
    %cst_28 = arith.constant dense<0xFF800000> : vector<16xf32>
    %52 = vector.multi_reduction <maximumf>, %51, %cst_28 [1] : vector<16x16xf32> to vector<16xf32>
    %53 = vector.shape_cast %52 : vector<16xf32> to vector<16x1xf32>
    %54 = vector.broadcast %53 : vector<16x1xf32> to vector<16x16xf32>
    %55 = arith.subf %51, %54 : vector<16x16xf32>
    %56 = math.exp %55 : vector<16x16xf32>
    %cst_29 = arith.constant dense<0.000000e+00> : vector<16xf32>
    %57 = vector.multi_reduction <add>, %56, %cst_29 [1] : vector<16x16xf32> to vector<16xf32>
    %58 = vector.shape_cast %57 : vector<16xf32> to vector<16x1xf32>
    %59 = tpu.reciprocal %58 {approx = true} : vector<16x1xf32> -> vector<16x1xf32>
    %60 = vector.broadcast %59 : vector<16x1xf32> to vector<16x16xf32>
    %61 = arith.mulf %56, %60 : vector<16x16xf32>
    %62 = arith.truncf %61 : vector<16x16xf32> to vector<16x16xbf16>
    %cst_30 = arith.constant dense<0.000000e+00> : vector<16x128xf32>
    %63 = tpu.matmul %62, %30, %cst_30 {dimension_numbers = #tpu.dot_dimension_numbers<[1], [0], [0], [1], [0, 0, 1, 1], [], []>} : vector<16x16xbf16>, vector<16x128xbf16>, vector<16x128xf32> -> vector<16x128xf32>
    %c0_31 = arith.constant 0 : index
    %c0_32 = arith.constant 0 : index
    %64 = vector.load %arg8[%c0_31, %c0_32] : memref<1x128xf32, #tpu.memory_space<vmem>>, vector<1x128xf32>
    %65 = vector.broadcast %64 : vector<1x128xf32> to vector<16x128xf32>
    %66 = arith.addf %63, %65 : vector<16x128xf32>
    %67 = tpu.iota {dimensions = array<i32: 0>} : vector<16x1xi32>
    %c16_i32 = arith.constant 16 : i32
    %68 = vector.broadcast %c16_i32 : i32 to vector<16x1xi32>
    %69 = arith.cmpi slt, %67, %68 : vector<16x1xi32>
    %70 = arith.extui %69 : vector<16x1xi1> to vector<16x1xi32>
    %71 = arith.sitofp %70 : vector<16x1xi32> to vector<16x1xf32>
    %72 = vector.broadcast %71 : vector<16x1xf32> to vector<16x128xf32>
    %73 = arith.mulf %66, %72 : vector<16x128xf32>
    %cst_33 = arith.constant dense<0.000000e+00> : vector<128xf32>
    %74 = vector.multi_reduction <add>, %73, %cst_33 [0] : vector<16x128xf32> to vector<128xf32>
    %75 = vector.shape_cast %74 : vector<128xf32> to vector<1x128xf32>
    %cst_34 = arith.constant 6.250000e-02 : f32
    %76 = vector.broadcast %cst_34 : f32 to vector<1x128xf32>
    %77 = arith.mulf %75, %76 : vector<1x128xf32>
    %c0_35 = arith.constant 0 : index
    %c0_36 = arith.constant 0 : index
    %78 = vector.load %arg11[%c0_35, %c0_36] : memref<1x128xf32, #tpu.memory_space<vmem>>, vector<1x128xf32>
    %79 = arith.mulf %78, %77 : vector<1x128xf32>
    %80 = vector.broadcast %79 : vector<1x128xf32> to vector<16x128xf32>
    %81 = arith.subf %66, %80 : vector<16x128xf32>
    %82 = arith.mulf %81, %81 : vector<16x128xf32>
    %83 = vector.broadcast %71 : vector<16x1xf32> to vector<16x128xf32>
    %84 = arith.mulf %82, %83 : vector<16x128xf32>
    %cst_37 = arith.constant dense<0.000000e+00> : vector<128xf32>
    %85 = vector.multi_reduction <add>, %84, %cst_37 [0] : vector<16x128xf32> to vector<128xf32>
    %86 = vector.shape_cast %85 : vector<128xf32> to vector<1x128xf32>
    %cst_38 = arith.constant 6.250000e-02 : f32
    %87 = vector.broadcast %cst_38 : f32 to vector<1x128xf32>
    %88 = arith.mulf %86, %87 : vector<1x128xf32>
    %cst_39 = arith.constant 9.99999974E-6 : f32
    %89 = vector.broadcast %cst_39 : f32 to vector<1x128xf32>
    %90 = arith.addf %88, %89 : vector<1x128xf32>
    %91 = math.rsqrt %90 : vector<1x128xf32>
    %92 = vector.broadcast %91 : vector<1x128xf32> to vector<16x128xf32>
    %93 = arith.mulf %81, %92 : vector<16x128xf32>
    %c0_40 = arith.constant 0 : index
    %c0_41 = arith.constant 0 : index
    %94 = vector.load %arg9[%c0_40, %c0_41] : memref<1x128xf32, #tpu.memory_space<vmem>>, vector<1x128xf32>
    %95 = vector.broadcast %94 : vector<1x128xf32> to vector<16x128xf32>
    %96 = arith.mulf %93, %95 : vector<16x128xf32>
    %c0_42 = arith.constant 0 : index
    %c0_43 = arith.constant 0 : index
    %97 = vector.load %arg10[%c0_42, %c0_43] : memref<1x128xf32, #tpu.memory_space<vmem>>, vector<1x128xf32>
    %98 = vector.broadcast %97 : vector<1x128xf32> to vector<16x128xf32>
    %99 = arith.addf %96, %98 : vector<16x128xf32>
    %100 = arith.truncf %99 : vector<16x128xf32> to vector<16x128xbf16>
    %c0_44 = arith.constant 0 : index
    %c0_45 = arith.constant 0 : index
    %101 = vector.load %arg12[%c0_44, %c0_45] : memref<128x256xbf16, #tpu.memory_space<vmem>>, vector<128x256xbf16>
    %cst_46 = arith.constant dense<0.000000e+00> : vector<16x256xf32>
    %102 = tpu.matmul %100, %101, %cst_46 {dimension_numbers = #tpu.dot_dimension_numbers<[1], [0], [0], [1], [0, 0, 1, 1], [], []>} : vector<16x128xbf16>, vector<128x256xbf16>, vector<16x256xf32> -> vector<16x256xf32>
    %c0_47 = arith.constant 0 : index
    %c0_48 = arith.constant 0 : index
    %103 = vector.load %arg13[%c0_47, %c0_48] : memref<128x256xbf16, #tpu.memory_space<vmem>>, vector<128x256xbf16>
    %cst_49 = arith.constant dense<0.000000e+00> : vector<16x256xf32>
    %104 = tpu.matmul %1, %103, %cst_49 {dimension_numbers = #tpu.dot_dimension_numbers<[1], [0], [0], [1], [0, 0, 1, 1], [], []>} : vector<16x128xbf16>, vector<128x256xbf16>, vector<16x256xf32> -> vector<16x256xf32>
    %105 = arith.addf %102, %104 : vector<16x256xf32>
    %c0_50 = arith.constant 0 : index
    %c0_51 = arith.constant 0 : index
    %106 = vector.load %arg14[%c0_50, %c0_51] : memref<1x256xf32, #tpu.memory_space<vmem>>, vector<1x256xf32>
    %107 = vector.broadcast %106 : vector<1x256xf32> to vector<16x256xf32>
    %108 = arith.addf %105, %107 : vector<16x256xf32>
    %109 = vector.extract_strided_slice %108 {offsets = [0, 0], sizes = [16, 128], strides = [1, 1]} : vector<16x256xf32> to vector<16x128xf32>
    %110 = vector.extract_strided_slice %108 {offsets = [0, 128], sizes = [16, 128], strides = [1, 1]} : vector<16x256xf32> to vector<16x128xf32>
    %cst_52 = arith.constant 8.000000e-01 : f32
    %111 = vector.broadcast %cst_52 : f32 to vector<16x128xf32>
    %112 = arith.mulf %111, %110 : vector<16x128xf32>
    %cst_53 = arith.constant 2.000000e-01 : f32
    %113 = vector.broadcast %cst_53 : f32 to vector<16x128xf32>
    %114 = arith.mulf %113, %109 : vector<16x128xf32>
    %115 = arith.addf %112, %114 : vector<16x128xf32>
    %cst_54 = arith.constant 8.000000e-01 : f32
    %116 = vector.broadcast %cst_54 : f32 to vector<16x128xf32>
    %117 = arith.mulf %116, %109 : vector<16x128xf32>
    %cst_55 = arith.constant 2.000000e-01 : f32
    %118 = vector.broadcast %cst_55 : f32 to vector<16x128xf32>
    %119 = arith.mulf %118, %110 : vector<16x128xf32>
    %120 = arith.addf %117, %119 : vector<16x128xf32>
    %121 = vector.shape_cast %4 : vector<16x1xi1> to vector<16x1xi1>
    %122 = vector.broadcast %121 : vector<16x1xi1> to vector<16x128xi1>
    %123 = arith.select %122, %115, %120 : vector<16x128xi1>, vector<16x128xf32>
    %c0_56 = arith.constant 0 : index
    %c0_57 = arith.constant 0 : index
    %124 = vector.load %arg15[%c0_56, %c0_57] : memref<16x128xf32, #tpu.memory_space<vmem>>, vector<16x128xf32>
    tpu.vector_store %arg15[%c0_56, %c0_57], %123 {strides = array<i32>} : memref<16x128xf32, #tpu.memory_space<vmem>>, vector<16x128xf32>,
    return
  }
}

</mosaic_0001>

<bundles_post_ra>
// kernel: glass_conv_forward.1
= control target key start
LH: loop header
LB: loop body
LE: loop exit
PB: predicated region body
PF: predicated region fallthrough
CT: control target
= control target key end

     0   :  { %v1113_v2 = vmov 0   ;;  %v1114_v4 = vmov 0.0   ;;  %s1480_s0 = inlined_call_operand.vmem [shape: f32[16,128], index: 0, kind: input, shape index: {}]   ;;  %s1481_s1 = inlined_call_operand.vmem [shape: f32[16,1], index: 1, kind: input, shape index: {}]   ;;  %s1482_s2 = inlined_call_operand.vmem [shape: f32[16,16], index: 2, kind: input, shape index: {}]   ;;  %s1483_s3 = inlined_call_operand.vmem [shape: bf16[128,256], index: 3, kind: input, shape index: {}]   ;;  %s1484_s4 = inlined_call_operand.vmem [shape: f32[1,256], index: 4, kind: input, shape index: {}]   ;;  %s1485_s5 = inlined_call_operand.vmem [shape: bf16[128,128], index: 5, kind: input, shape index: {}]   ;;  %s1486_s6 = inlined_call_operand.vmem [shape: bf16[8,128], index: 6, kind: input, shape index: {}]   ;;  %s1487_s7 = inlined_call_operand.vmem [shape: f32[1,128], index: 7, kind: input, shape index: {}]   ;;  %s1488_s8 = inlined_call_operand.vmem [shape: f32[1,128], index: 8, kind: input, shape index: {}]   ;;  %s1489_s9 = inlined_call_operand.vmem [shape: f32[1,128], index: 9, kind: input, shape index: {}]   ;;  %s1490_s10 = inlined_call_operand.vmem [shape: f32[1,128], index: 10, kind: input, shape index: {}]   ;;  %s1491_s11 = inlined_call_operand.vmem [shape: f32[1,128], index: 11, kind: input, shape index: {}]   ;;  %s1492_s12 = inlined_call_operand.vmem [shape: bf16[128,256], index: 12, kind: input, shape index: {}]   ;;  %s1493_s13 = inlined_call_operand.vmem [shape: bf16[128,256], index: 13, kind: input, shape index: {}]   ;;  %s1494_s14 = inlined_call_operand.vmem [shape: f32[1,256], index: 14, kind: input, shape index: {}]   ;;  %s1495_s15 = inlined_call_operand.hbm [shape: f32[16,128], index: 15, kind: output, shape index: {}]  }
   0x1   :  { %v999_v0 = vld [vmem:[%s1483_s3 + $0x4] ss:$8 sps:$4 sm:$0xff]   ;;  %v1001_v1 = vld [vmem:[%s1483_s3] ss:$8 sps:$4 sm:$0xff]   ;;  %199 = vmatprep.mubr.bf16.mxu1 %v1113_v2  ;;  %998 = vset.pattern.permute.xlu0 %v1113_v2  ;;  %v1002_v3 = vld [vmem:[%s1483_s3 + $0x14] ss:$8 sps:$4 sm:$0xff]  }
   0x2   :  { %167 = vmatprep.subr.bf16.mxu1 %v999_v0  ;;  %976 = vmatprep.subr.bf16.mxu0 %v1114_v4  ;;  %v1004_v5 = vld [vmem:[%s1483_s3 + $0x10] ss:$8 sps:$4 sm:$0xff]   ;;  %v1005_v6 = vld [vmem:[%s1483_s3 + $0x24] ss:$8 sps:$4 sm:$0xff]   ;;  %v1007_v7 = vld [vmem:[%s1483_s3 + $0x20] ss:$8 sps:$4 sm:$0xff]  }
   0x3   :  { %168 = vmatpush1.bf16.msra.mxu1 %v1001_v1  ;;  %v1008_v8 = vld [vmem:[%s1483_s3 + $0x34] ss:$8 sps:$4 sm:$0xff]   ;;  %v1010_v9 = vld [vmem:[%s1483_s3 + $0x30] ss:$8 sps:$4 sm:$0xff]   ;;  %v1011_v10 = vld [vmem:[%s1483_s3 + $0x44] ss:$8 sps:$4 sm:$0xff]  }
   0x4   :  { %169 = vmatprep.subr.bf16.mxu1 %v1002_v3  ;;  %v55_v11 = vld [vmem:[%s1481_s1] sm:$0xff]  ;;  %v56_v12 = vld [vmem:[%s1481_s1 + $0x8] sm:$0xff]  ;;  %v1014_v16 = vld [vmem:[%s1483_s3 + $0x54] ss:$8 sps:$4 sm:$0xff]  }
   0x5   :  { %vm57_vm0 = vcmp.gt.f32.partialorder %v55_v11, 0.5  ;;  %vm58_vm1 = vcmp.gt.f32.partialorder %v56_v12, 0.5  ;;  %v1013_v13 = vld [vmem:[%s1483_s3 + $0x40] ss:$8 sps:$4 sm:$0xff]   ;;  %v1016_v17 = vld [vmem:[%s1483_s3 + $0x50] ss:$8 sps:$4 sm:$0xff]  }
   0x6   :  { %v226_v14 = vsel %vm57_vm0, 1, %v1113_v2  ;;  %v227_v15 = vsel %vm58_vm1, 1, %v1113_v2  ;;  %v1017_v18 = vld [vmem:[%s1483_s3 + $0x64] ss:$8 sps:$4 sm:$0xff]   ;;  %v1019_v19 = vld [vmem:[%s1483_s3 + $0x60] ss:$8 sps:$4 sm:$0xff]  }
   0x7   :  { %170 = vmatpush1.bf16.msra.mxu1 %v1004_v5  ;;  %229 = vperm.xlu0 %998, %v226_v14   ;;  %v1020_v20 = vld [vmem:[%s1483_s3 + $0x74] ss:$8 sps:$4 sm:$0xff]   ;;  %v1022_v21 = vld [vmem:[%s1483_s3 + $0x70] ss:$8 sps:$4 sm:$0xff]   ;;  %v52_v22 = vld [vmem:[%s1480_s0] sm:$0xff] }
   0x8   :  { %171 = vmatprep.subr.bf16.mxu1 %v1005_v6  ;;  %v53_v23 = vld [vmem:[%s1480_s0 + $0x8] sm:$0xff] }
   0x9   :  { %v1264_v24 = vpack.c.bf16 %v53_v23, %v52_v22 }
   0xb   :  { %172 = vmatpush1.bf16.msra.mxu1 %v1007_v7  ;;  %232 = vperm.xlu0 %998, %v227_v15  }
   0xc   :  { %173 = vmatprep.subr.bf16.mxu1 %v1008_v8 }
   0xf   :  { %174 = vmatpush1.bf16.msra.mxu1 %v1010_v9 }
  0x10   :  { %175 = vmatprep.subr.bf16.mxu1 %v1011_v10 }
  0x13   :  { %176 = vmatpush1.bf16.msra.mxu1 %v1013_v13 }
  0x14   :  { %177 = vmatprep.subr.bf16.mxu1 %v1014_v16 }
  0x17   :  { %178 = vmatpush1.bf16.msra.mxu1 %v1016_v17 }
  0x18   :  { %179 = vmatprep.subr.bf16.mxu1 %v1017_v18 }
  0x1b   :  { %180 = vmatpush1.bf16.msra.mxu1 %v1019_v19 }
  0x1c   :  { %181 = vmatprep.subr.bf16.mxu1 %v1020_v20 }
  0x1d   :  { %20 = vsyncpa [#allocation3], 0  ;;  %v1023_v25 = vld [vmem:[%s1485_s5] sm:$0xff]   ;;  %v1024_v26 = vld [vmem:[%s1485_s5 + $0x8] sm:$0xff]   ;;  %vm1115_vm2 = vmmov 0   ;;  %v77_v33 = vlaneseq  ;;  %vm417_vm9 = vcmask 130048  }
  0x1e   :  { %v1025_v27 = vld [vmem:[%s1485_s5 + $0x10] sm:$0xff]   ;;  %v1026_v28 = vld [vmem:[%s1485_s5 + $0x18] sm:$0xff]   ;;  %v1027_v29 = vld [vmem:[%s1485_s5 + $0x20] sm:$0xff]   ;;  %978 = vmatprep.mubr.msk.bf16.mxu0 %vm1115_vm2, %v1114_v4 }
  0x1f   :  { %182 = vmatpush1.bf16.msra.mxu1 %v1022_v21  ;;  %v1028_v30 = vld [vmem:[%s1485_s5 + $0x28] sm:$0xff]   ;;  %v1029_v31 = vld [vmem:[%s1485_s5 + $0x30] sm:$0xff]   ;;  %v1030_v32 = vld [vmem:[%s1485_s5 + $0x38] sm:$0xff]   ;;  %v1304_v34 = vshrl.u32 %v77_v33, 7 }
  0x20   :  { %956 = vmatprep.subr.bf16.mxu1 %v1114_v4  ;;  %v75_v36 = vld [vmem:[%s1484_s4] sm:$0x3]  ;;  %v412_v19 = vld [vmem:[%s1482_s2 + $0x8] sm:$0xff] }
  0x21   :  { %v1307_v35 = vsub.s32 0, %v1304_v34  ;;  %v83_v37 = vsub.s32 1, %v1304_v34  ;;  %v906_v7 = vld [vmem:[%s1487_s7] ss:$0 sm:$0xff]  ;;  %vm414_vm5 = vcmp.gt.f32.partialorder %v412_v19, 0.5 }
  0x22   :  { %200 = vmatmul.mubr.bf16.vlgmr.msra.gmra.mrb[0].mxu1 %v1264_v24  ;;  %v358_v15 = vld [vmem:[%s1486_s6] sm:$0xf]  ;;  %v1070_v19 = vld [vmem:[%s1492_s12 + $0x50] ss:$8 sps:$4 sm:$0xff]  }
  0x23   :  { %957 = vmatpush3.bf16.msra.mxu1 %v1023_v25  ;;  %972 = vmatprep.mubr.msk.bf16.mxu1 %vm1115_vm2, %v1114_v4  ;;  %v80_v38 = vrot.slane %v75_v36, %v1307_v35  ;;  %v84_v39 = vrot.slane %v75_v36, %v83_v37  ;;  %v411_v20 = vld [vmem:[%s1482_s2] sm:$0xff] }
  0x24   :  { %958 = vmatprep.subr.bf16.mxu1 %v1114_v4  ;;  %vm413_vm6 = vcmp.gt.f32.partialorder %v411_v20, 0.5  ;;  %v1075_v20 = vld [vmem:[%s1492_s12 + $0x64] ss:$8 sps:$4 sm:$0xff]  }
  0x27   :  { %959 = vmatpush3.bf16.msra.mxu1 %v1024_v26 }
  0x28   :  { %960 = vmatprep.subr.bf16.mxu1 %v1114_v4 }
  0x2b   :  { %961 = vmatpush3.bf16.msra.mxu1 %v1025_v27 }
  0x2c   :  { %962 = vmatprep.subr.bf16.mxu1 %v1114_v4 }
  0x2f   :  { %963 = vmatpush3.bf16.msra.mxu1 %v1026_v28 }
  0x30   :  { %964 = vmatprep.subr.bf16.mxu1 %v1114_v4 }
  0x33   :  { %965 = vmatpush3.bf16.msra.mxu1 %v1027_v29 }
  0x34   :  { %966 = vmatprep.subr.bf16.mxu1 %v1114_v4 }
  0x37   :  { %967 = vmatpush3.bf16.msra.mxu1 %v1028_v30 }
  0x38   :  { %968 = vmatprep.subr.bf16.mxu1 %v1114_v4 }
  0x3b   :  { %969 = vmatpush3.bf16.msra.mxu1 %v1029_v31 }
  0x3c   :  { %970 = vmatprep.subr.bf16.mxu1 %v1114_v4 }
  0x3f   :  { %971 = vmatpush3.bf16.msra.mxu1 %v1030_v32 }
  0x40   :  { %982 = vmatprep.subr.bf16.mxu1 %v1114_v4 }
  0x86   :  { %v1316_v44 = vpop.permute.xlu0 %229 }
  0x87   :  { %vm234_vm3 = vcmp.eq.s32.totalorder %v1316_v44, 1 }
  0x8a   :  { %v1318_v63 = vpop.permute.xlu0 %232 }
  0x8b   :  { %vm235_vm4 = vcmp.eq.s32.totalorder %v1318_v63, 1 }
  0xf5   :  { %v201_v40 = vpop.f32.mrb[0].mxu1 }
  0xf6   :  { %v202_v41 = vadd.f32 %v201_v40, %v80_v38  ;;  %v203_v42 = vpop.f32.mrb[1].mxu1 }
  0xf7   :  { %v204_v43 = vadd.f32 %v203_v42, %v84_v39  ;;  %v205_v45 = vpop.f32.mrb[2].mxu1 }
  0xf8   :  { %v210_v46 = vmax.f32 %v202_v41, 0.0  ;;  %v206_v47 = vadd.f32 %v205_v45, %v80_v38  ;;  %v207_v48 = vpop.f32.mrb[3].mxu1 }
  0xf9   :  { %v211_v49 = vmax.f32 %v204_v43, 0.0  ;;  %v208_v50 = vadd.f32 %v207_v48, %v84_v39 }
  0xfa   :  { %v216_v51 = vmul.f32 0.2, %v210_v46  ;;  %v220_v52 = vmul.f32 0.8, %v210_v46  ;;  %v212_v53 = vmax.f32 %v206_v47, 0.0 }
  0xfb   :  { %v214_v54 = vmul.f32 0.8, %v211_v49  ;;  %v222_v55 = vmul.f32 0.2, %v211_v49  ;;  %v213_v56 = vmax.f32 %v208_v50, 0.0 }
  0xfc   :  { %v217_v57 = vmul.f32 0.2, %v212_v53  ;;  %v221_v58 = vmul.f32 0.8, %v212_v53 }
  0xfd   :  { %v218_v59 = vadd.f32 %v216_v51, %v214_v54  ;;  %v224_v60 = vadd.f32 %v222_v55, %v220_v52  ;;  %v215_v61 = vmul.f32 0.8, %v213_v56  ;;  %v223_v62 = vmul.f32 0.2, %v213_v56  ;;  %v1033_v56 = vld [vmem:[%s1493_s13 + $0x4] ss:$8 sps:$4 sm:$0xff]  }
  0xff   :  { %v236_v0 = vsel %vm234_vm3, %v218_v59, %v224_v60  ;;  %v219_v1 = vadd.f32 %v217_v57, %v215_v61  ;;  %v225_v3 = vadd.f32 %v223_v62, %v221_v58  ;;  %v1031_v57 = vld [vmem:[%s1493_s13] ss:$8 sps:$4 sm:$0xff]   ;;  %v1036_v58 = vld [vmem:[%s1493_s13 + $0x14] ss:$8 sps:$4 sm:$0xff]   ;;  %v1034_v59 = vld [vmem:[%s1493_s13 + $0x10] ss:$8 sps:$4 sm:$0xff]  }
 0x100   :  { %v1039_v60 = vld [vmem:[%s1493_s13 + $0x24] ss:$8 sps:$4 sm:$0xff]   ;;  %v1037_v61 = vld [vmem:[%s1493_s13 + $0x20] ss:$8 sps:$4 sm:$0xff]   ;;  %v1042_v62 = vld [vmem:[%s1493_s13 + $0x34] ss:$8 sps:$4 sm:$0xff]  }
 0x101   :  { %v237_v5 = vsel %vm235_vm4, %v219_v1, %v225_v3  ;;  %v1045_v1 = vld [vmem:[%s1493_s13 + $0x44] ss:$8 sps:$4 sm:$0xff]   ;;  %v1043_v3 = vld [vmem:[%s1493_s13 + $0x40] ss:$8 sps:$4 sm:$0xff]  }
 0x102   :  { %v238_v6 = vpack.c.bf16 %v237_v5, %v236_v0  ;;  %v1040_v0 = vld [vmem:[%s1493_s13 + $0x30] ss:$8 sps:$4 sm:$0xff]   ;;  %v1048_v5 = vld [vmem:[%s1493_s13 + $0x54] ss:$8 sps:$4 sm:$0xff]  }
 0x104   :  { %973 = vmatmul.mubr.bf16.vlgmr.msra.gmra.mrb[4].mxu1 %v238_v6  ;;  %v1046_v6 = vld [vmem:[%s1493_s13 + $0x50] ss:$8 sps:$4 sm:$0xff]  }
 0x105   :  { %984 = vmatprep.mubr.msk.bf16.mxu1 %vm1115_vm2, %v1114_v4 }
 0x1d7   :  { %v337_v8 = vpop.f32.mrb[4].mxu1 }
 0x1d8   :  { %v974_v9 = vpop.f32.mrb[5].mxu1  ;;  %v352_v10 = vmul.f32 %v906_v7, %v337_v8 }
 0x1d9   :  { %v340_v11 = vpop.f32.mrb[6].mxu1  ;;  %v1054_v9 = vld [vmem:[%s1493_s13 + $0x74] ss:$8 sps:$4 sm:$0xff]  }
 0x1da   :  { %354 = vadd.xlane.f32.xlu1 %v352_v10  ;;  %v975_v12 = vpop.f32.mrb[7].mxu1  ;;  %v344_v13 = vpack.c.bf16 %v340_v11, %v337_v8  ;;  %v353_v14 = vmul.f32 %v906_v7, %v340_v11  ;;  %v1051_v7 = vld [vmem:[%s1493_s13 + $0x64] ss:$8 sps:$4 sm:$0xff]   ;;  %v1049_v8 = vld [vmem:[%s1493_s13 + $0x60] ss:$8 sps:$4 sm:$0xff]  }
 0x1db   :  { %v1052_v10 = vld [vmem:[%s1493_s13 + $0x70] ss:$8 sps:$4 sm:$0xff]   ;;  %v1057_v11 = vld [vmem:[%s1492_s12 + $0x4] ss:$8 sps:$4 sm:$0xff]   ;;  %v1055_v12 = vld [vmem:[%s1492_s12] ss:$8 sps:$4 sm:$0xff]  }
 0x1dc   :  { %977 = vmatpush3.bf16.xpose.msra.mxu0 %v344_v13  ;;  %983 = vmatpush3.bf16.msra.mxu1 %v344_v13  ;;  %v1060_v13 = vld [vmem:[%s1492_s12 + $0x14] ss:$8 sps:$4 sm:$0xff]  }
 0x1dd   :  { %668 = vmatprep.subr.bf16.mxu0 %v1033_v56 }
 0x1de   :  { %356 = vadd.xlane.f32.xlu1 %v353_v14  ;;  %v1058_v14 = vld [vmem:[%s1492_s12 + $0x10] ss:$8 sps:$4 sm:$0xff]  }
 0x1e3   :  { %979 = vmatmul.mubr.bf16.vlgmr.msra.gmra.mrb[0].mxu0 %v358_v15  ;;  %v1063_v15 = vld [vmem:[%s1492_s12 + $0x24] ss:$8 sps:$4 sm:$0xff]  }
 0x1e4   :  { %700 = vmatprep.mubr.bf16.mxu0 %v1113_v2  ;;  %669 = vmatpush1.bf16.msra.mxu0 %v1031_v57 }
 0x1e5   :  { %670 = vmatprep.subr.bf16.mxu0 %v1036_v58 }
 0x1e8   :  { %671 = vmatpush1.bf16.msra.mxu0 %v1034_v59 }
 0x1e9   :  { %672 = vmatprep.subr.bf16.mxu0 %v1039_v60 }
 0x1ec   :  { %673 = vmatpush1.bf16.msra.mxu0 %v1037_v61  ;;  %v909_v61 = vld [vmem:[%s1489_s9] ss:$0 sm:$0xff]  ;;  %s1116_s9 = smov [#allocation2]  }
 0x1ed   :  { %674 = vmatprep.subr.bf16.mxu0 %v1042_v62 }
 0x1f0   :  { %675 = vmatpush1.bf16.msra.mxu0 %v1040_v0 }
 0x1f1   :  { %676 = vmatprep.subr.bf16.mxu0 %v1045_v1  ;;  %v910_v1 = vld [vmem:[%s1490_s10] ss:$0 sm:$0xff]  ;;  %s871_s10 = sshll.u32 %s1116_s9, 4  ;;  %s872_s10 = int_to_ptr.vmem [resolvable:$true] %s871_s10 }
 0x1f2   :  { %p1094_p1 = scmp.lt.s32.totalorder %s872_s10, %s872_s10 }
 0x1f4   :  { %677 = vmatpush1.bf16.msra.mxu0 %v1043_v3 }
 0x1f5   :  { %678 = vmatprep.subr.bf16.mxu0 %v1048_v5 }
 0x1f8   :  { %679 = vmatpush1.bf16.msra.mxu0 %v1046_v6 }
 0x1f9   :  { %680 = vmatprep.subr.bf16.mxu0 %v1051_v7 }
 0x1fc   :  { %681 = vmatpush1.bf16.msra.mxu0 %v1049_v8 }
 0x1fd   :  { %682 = vmatprep.subr.bf16.mxu0 %v1054_v9  ;;  %v834_v9 = vld [vmem:[%s1494_s14] sm:$0x3]  ;;  %s1089_s14 = scalar_lea.vmem %s872_s10, 256 }
 0x1fe   :  { %p1090_p0 = scmp.ne.s32.totalorder %s872_s10, %s1089_s14  ;;  %p1095_p2 = scmp.lt.s32.totalorder %s1089_s14, %s1089_s14 }
 0x200   :  { %683 = vmatpush1.bf16.msra.mxu0 %v1052_v10  ;;  %v839_v10 = vrot.slane %v834_v9, %v1307_v35  ;;  %p1096_p3 = por %p1095_p2, %p1094_p1 }
 0x201   :  { %791 = vmatprep.subr.bf16.mxu0 %v1057_v11  ;;  %v843_v11 = vrot.slane %v834_v9, %v83_v37 }
 0x202   :  { %p1097_p4 = pnand %p1096_p3, %p1090_p0 }
 0x203   :  { %701 = vmatmul.mubr.bf16.vlgmr.msra.gmra.mrb[4].mxu0 %v1264_v24  ;;  %v1061_v24 = vld [vmem:[%s1492_s12 + $0x20] ss:$8 sps:$4 sm:$0xff]  }
 0x204   :  { %792 = vmatpush1.bf16.msra.mxu0 %v1055_v12  ;;  %823 = vmatprep.mubr.bf16.mxu0 %v1113_v2  ;;  %v1066_v2 = vld [vmem:[%s1492_s12 + $0x34] ss:$8 sps:$4 sm:$0xff]  }
 0x205   :  { %793 = vmatprep.subr.bf16.mxu0 %v1060_v13 }
 0x208   :  { %794 = vmatpush1.bf16.msra.mxu0 %v1058_v14 }
 0x209   :  { %795 = vmatprep.subr.bf16.mxu0 %v1063_v15 }
 0x20c   :  { %796 = vmatpush1.bf16.msra.mxu0 %v1061_v24 }
 0x20d   :  { %797 = vmatprep.subr.bf16.mxu0 %v1066_v2 }
 0x267   :  { %v355_v4 = vpop.xlane.xlu1 %354 }
 0x26b   :  { %v357_v21 = vpop.xlane.xlu1 %356 }
 0x2b6   :  { %v393_v16 = vpop.f32.mrb[0].mxu0 }
 0x2b7   :  { %v402_v17 = vrot.slane %v393_v16, %v1307_v35  ;;  %v980_v18 = vpop.f32.mrb[1].mxu0  ;;  %v1069_v16 = vld [vmem:[%s1492_s12 + $0x44] ss:$8 sps:$4 sm:$0xff]  }
 0x2b8   :  { %v396_v22 = vpop.f32.mrb[2].mxu0  ;;  %v1072_v18 = vld [vmem:[%s1492_s12 + $0x54] ss:$8 sps:$4 sm:$0xff]  }
 0x2b9   :  { %v403_v23 = vadd.f32 %v402_v17, %v355_v4  ;;  %v404_v25 = vadd.f32 %v402_v17, %v357_v21  ;;  %v981_v26 = vpop.f32.mrb[3].mxu0  ;;  %v1064_v4 = vld [vmem:[%s1492_s12 + $0x30] ss:$8 sps:$4 sm:$0xff]   ;;  %v1067_v17 = vld [vmem:[%s1492_s12 + $0x40] ss:$8 sps:$4 sm:$0xff]  }
 0x2ba   :  { %798 = vmatpush1.bf16.msra.mxu0 %v1064_v4  ;;  %v1073_v21 = vld [vmem:[%s1492_s12 + $0x60] ss:$8 sps:$4 sm:$0xff]   ;;  %v1078_v22 = vld [vmem:[%s1492_s12 + $0x74] ss:$8 sps:$4 sm:$0xff]  }
 0x2bb   :  { %vm406_vm7 = vcmp.ge.f32.partialorder %v404_v25, 0.0  ;;  %v408_v27 = vmul.f32 0.2, %v404_v25  ;;  %vm405_vm8 = vcmp.ge.f32.partialorder %v403_v23, 0.0  ;;  %v407_v28 = vmul.f32 0.2, %v403_v23  ;;  %799 = vmatprep.subr.bf16.mxu0 %v1069_v16 }
 0x2bd   :  { %v410_v29 = vsel %vm406_vm7, %v404_v25, %v408_v27  ;;  %v409_v30 = vsel %vm405_vm8, %v403_v23, %v407_v28  ;;  %v1076_v23 = vld [vmem:[%s1492_s12 + $0x70] ss:$8 sps:$4 sm:$0xff]   ;;  %v907_v25 = vld [vmem:[%s1488_s8] ss:$0 sm:$0xff] }
 0x2be   :  { %v416_v31 = vsel %vm414_vm5, %v410_v29, -1e+30  ;;  %v415_v32 = vsel %vm413_vm6, %v409_v30, -1e+30  ;;  %800 = vmatpush1.bf16.msra.mxu0 %v1067_v17 }
 0x2bf   :  { %v421_v33 = vsel %vm417_vm9, %v416_v31, -inf  ;;  %v418_v36 = vsel %vm417_vm9, %v415_v32, -inf  ;;  %801 = vmatprep.subr.bf16.mxu0 %v1072_v18 }
 0x2c0   :  { %422 = vmax.xlane.f32.xlu1 %v421_v33  ;;  %419 = vmax.xlane.f32.xlu0 %v418_v36 }
 0x2c2   :  { %802 = vmatpush1.bf16.msra.mxu0 %v1070_v19 }
 0x2c3   :  { %803 = vmatprep.subr.bf16.mxu0 %v1075_v20 }
 0x2c6   :  { %804 = vmatpush1.bf16.msra.mxu0 %v1073_v21 }
 0x2c7   :  { %805 = vmatprep.subr.bf16.mxu0 %v1078_v22 }
 0x2ca   :  { %806 = vmatpush1.bf16.msra.mxu0 %v1076_v23 }
 0x34d   :  { %v423_v38 = vpop.xlane.xlu1 %422  ;;  %v420_v39 = vpop.xlane.xlu0 %419 }
 0x34e   :  { %v425_v40 = vsub.f32 %v416_v31, %v423_v38  ;;  %v424_v41 = vsub.f32 %v415_v32, %v420_v39 }
 0x350   :  { %v426_v42 = vmul.f32 1.442695, %v424_v41  ;;  %v428_v43 = vmul.f32 1.442695, %v425_v40 }
 0x352   :  { %1079 = vpow2.f32 %v426_v42  ;;  %v511_v42 = vld [vmem:[%s1491_s11] sm:$0x1] }
 0x353   :  { %1081 = vpow2.f32 %v428_v43 }
 0x35c   :  { %v1080_v45 = vpop.eup %1079 }
 0x35d   :  { %v430_v46 = vsel %vm417_vm9, %v1080_v45, 0.0  ;;  %v1082_v47 = vpop.eup %1081 }
 0x35e   :  { %431 = vadd.xlane.f32.xlu1 %v430_v46  ;;  %v433_v48 = vsel %vm417_vm9, %v1082_v47, 0.0 }
 0x362   :  { %434 = vadd.xlane.f32.xlu1 %v433_v48 }
 0x3eb   :  { %v432_v49 = vpop.xlane.xlu1 %431 }
 0x3ec   :  { %1083 = vrcp.f32 %v432_v49 }
 0x3ef   :  { %v435_v50 = vpop.xlane.xlu1 %434 }
 0x3f0   :  { %1085 = vrcp.f32 %v435_v50 }
 0x3f6   :  { %v1084_v51 = vpop.eup %1083 }
 0x3f7   :  { %v438_v53 = vmul.f32 %v1084_v51, %v1080_v45 }
 0x3fa   :  { %v1086_v52 = vpop.eup %1085 }
 0x3fb   :  { %v439_v54 = vmul.f32 %v1086_v52, %v1082_v47 }
 0x3fd   :  { %v440_v55 = vpack.c.bf16 %v439_v54, %v438_v53 }
 0x3ff   :  { %985 = vmatmul.mubr.msk.bf16.vlgmr.msra.gmra.mrb[8].mxu1 %vm417_vm9, %v440_v55 }
 0x4d2   :  { %v485_v26 = vpop.f32.mrb[8].mxu1 }
 0x4d3   :  { %v986_v27 = vpop.f32.mrb[9].mxu1  ;;  %v486_v29 = vadd.f32 %v907_v25, %v485_v26 }
 0x4d4   :  { %v488_v28 = vpop.f32.mrb[10].mxu1 }
 0x4d5   :  { %v489_v30 = vadd.f32 %v907_v25, %v488_v28  ;;  %v987_v31 = vpop.f32.mrb[11].mxu1 }
 0x4d7   :  { %v503_v32 = vadd.f32 %v489_v30, %v486_v29 }
 0x4d9   :  { %v504_v33 = vrot.slane %v503_v32, 4 }
 0x4db   :  { %v505_v36 = vadd.f32 %v504_v33, %v503_v32 }
 0x4dd   :  { %v506_v38 = vrot.slane %v505_v36, 2 }
 0x4df   :  { %v507_v39 = vadd.f32 %v506_v38, %v505_v36 }
 0x4e1   :  { %v508_v40 = vrot.slane %v507_v39, 1 }
 0x4e3   :  { %v509_v41 = vadd.f32 %v508_v40, %v507_v39 }
 0x4e5   :  { %v510_v43 = vmul.f32 0.0625, %v509_v41 }
 0x4e7   :  { %v512_v45 = vmul.f32 %v511_v42, %v510_v43 }
 0x4e9   :  { %v517_v46 = vrot.slane %v512_v45, %v1307_v35 }
 0x4eb   :  { %v519_v47 = vsub.f32 %v486_v29, %v517_v46  ;;  %v520_v48 = vsub.f32 %v489_v30, %v517_v46 }
 0x4ed   :  { %v521_v49 = vmul.f32 %v519_v47, %v519_v47  ;;  %v522_v50 = vmul.f32 %v520_v48, %v520_v48 }
 0x4ef   :  { %v525_v51 = vadd.f32 %v522_v50, %v521_v49 }
 0x4f1   :  { %v526_v52 = vrot.slane %v525_v51, 4 }
 0x4f3   :  { %v527_v53 = vadd.f32 %v526_v52, %v525_v51 }
 0x4f5   :  { %v528_v54 = vrot.slane %v527_v53, 2 }
 0x4f7   :  { %v529_v55 = vadd.f32 %v528_v54, %v527_v53 }
 0x4f9   :  { %v530_v56 = vrot.slane %v529_v55, 1 }
 0x4fb   :  { %v531_v57 = vadd.f32 %v530_v56, %v529_v55 }
 0x4fd   :  { %v532_v58 = vmul.f32 0.0625, %v531_v57 }
 0x4ff   :  { %v533_v59 = vadd.f32 1e-05, %v532_v58 }
 0x501   :  { %1087 = vrsqrt.f32 %v533_v59 }
 0x50b   :  { %v1088_v60 = vpop.eup %1087 }
 0x50c   :  { %v535_v62 = vmul.f32 %v1088_v60, %v519_v47  ;;  %v536_v0 = vmul.f32 %v1088_v60, %v520_v48 }
 0x50e   :  { %v544_v3 = vmul.f32 %v909_v61, %v535_v62  ;;  %v545_v5 = vmul.f32 %v909_v61, %v536_v0 }
 0x510   :  { %v554_v6 = vadd.f32 %v910_v1, %v545_v5  ;;  %v553_v7 = vadd.f32 %v910_v1, %v544_v3 }
 0x512   :  { %v555_v8 = vpack.c.bf16 %v554_v6, %v553_v7 }
 0x514   :  { %824 = vmatmul.mubr.bf16.vlgmr.msra.gmra.mrb[4].mxu0 %v555_v8 }
 0x5e7   :  { %v825_v12 = vpop.f32.mrb[4].mxu0 }
 0x5e8   :  { %v846_v13 = vadd.f32 %v839_v10, %v825_v12  ;;  %v827_v14 = vpop.f32.mrb[5].mxu0 }
 0x5e9   :  { %v847_v15 = vadd.f32 %v843_v11, %v827_v14  ;;  %v829_v24 = vpop.f32.mrb[6].mxu0 }
 0x5ea   :  { %v852_v2 = vmul.f32 0.2, %v846_v13  ;;  %v856_v4 = vmul.f32 0.8, %v846_v13  ;;  %v848_v16 = vadd.f32 %v839_v10, %v829_v24  ;;  %v831_v17 = vpop.f32.mrb[7].mxu0 }
 0x5eb   :  { %v850_v18 = vmul.f32 0.8, %v847_v15  ;;  %v858_v19 = vmul.f32 0.2, %v847_v15  ;;  %v849_v20 = vadd.f32 %v843_v11, %v831_v17 }
 0x5ec   :  { %v853_v21 = vmul.f32 0.2, %v848_v16  ;;  %v857_v22 = vmul.f32 0.8, %v848_v16 }
 0x5ed   :  { %v854_v35 = vadd.f32 %v852_v2, %v850_v18  ;;  %v860_v23 = vadd.f32 %v858_v19, %v856_v4  ;;  %v851_v34 = vmul.f32 0.8, %v849_v20  ;;  %v859_v37 = vmul.f32 0.2, %v849_v20 }
 0x5ef   :  { %v855_v25 = vadd.f32 %v853_v21, %v851_v34  ;;  %v861_v26 = vadd.f32 %v859_v37, %v857_v22  ;;  %v862_v27 = vsel %vm234_vm3, %v854_v35, %v860_v23 }
 0x5f0   :  { %864 = vst [vmem:[#allocation2] sm:$0xff] %v862_v27 }
 0x5f1   :  { %v863_v28 = vsel %vm235_vm4, %v855_v25, %v861_v26 }
 0x5f2   :  { %865 = vst [vmem:[#allocation2 + $0x8] sm:$0xff] %v863_v28 }
 0x5f3   :  { %1100 = shalt.err (!%p1097_p4)
}
 0x5f4   :  { %s1101_s1 = scalar_lea.hbm %s1495_s15, 256 }
 0x5f5   :  { %p1102_p5 = scmp.ne.s32.totalorder %s1495_s15, %s1101_s1  ;;  %p1105_p6 = scmp.lt.u32.totalorder %s1101_s1, %s1495_s15 }
 0x5f7   :  { %p1107_p7 = pnand %p1105_p6, %p1102_p5 }
 0x5f9   :  { %1110 = shalt.err (!%p1107_p7)
}
 0x5fa   :  { %s1117_s19 = smov 128   ;;  %s1118_s20 = smov 8  }
 0x5fb   :  { %877 = dma.vmem_to_hbm [thread:$0]  %s872_s10, 256, %s1495_s15, [#allocation3], %s1117_s19, %s1117_s19, %s1118_s20  }
 0x5fc   :  { %1111 = dma.done.wait [#allocation3], 256  }
 0x5fd   :  { %1112 = vsyncadd [#allocation3], 4294967040 }
 0x5fe   :  { %881 = vsyncpa [#allocation3], 1 }

</bundles_post_ra>
